<compile_context>
chip_gen: v7x
topology: tpu7x:2x2x1
jax: 0.10.0
libtpu: 0.0.40
codegen_flags: <defaults>
</compile_context>

<pallas_src>
import math

import jax
import jax.numpy as jnp
import numpy as np
from jax import lax
from jax.experimental import pallas as pl
from jax.experimental.pallas import tpu as pltpu

A0 = 0.5291772105638411
KE = 14.399645351950548
KEHALF = KE / 2.0

N_PAD = 128   # padded number of atoms per system (lane axis)
P_PAD = 128   # padded number of pairs per system (lane axis)


def softplus_inverse(x: float) -> float:
    # inverse of softplus: log(exp(x) - 1)
    return x + math.log(-math.expm1(-x))


def softplus(x):
    return jnp.logaddexp(x, 0.0)


# ----------------------------------------------------------------------------
# Kernel
# ----------------------------------------------------------------------------
def _zbl_kernel(scal_ref, a_col_ref, c_col_ref,
                zf_ref, rij_ref, cut_ref, idx_ref, out_ref):
    # scalar parameters from SMEM
    apow = scal_ref[0]
    adiv = scal_ref[1]
    kehalf = scal_ref[2]

    zf = zf_ref[...]        # (1, N_PAD)    f32 (padded with 1.0)
    rij = rij_ref[...]      # (1, P_PAD)    f32 (padded with 1.0)
    cut = cut_ref[...]      # (1, P_PAD)    f32 (padded with 0.0)
    idx = idx_ref[...]      # (1, 2*P_PAD)  int32 [idx_i | idx_j] (padded with 0)

    a_col = a_col_ref[...]  # (4, 1) f32 = [a1, a2, a3, a4]^T
    c_col = c_col_ref[...]  # (4, 1) f32 = [c1, c2, c3, c4]^T (normalized)

    # ---- single concatenated gather via the MXU -----------------------------
    # onehot[n, p] = (n == idx[p]); built lane-dense, fed to the MXU in bf16
    # (0/1 one-hot and integer nuclear charges are exact in bf16).
    row = lax.broadcasted_iota(jnp.int32, (N_PAD, 2 * P_PAD), 0)
    onehot = (row == idx).astype(jnp.bfloat16)             # (N_PAD, 2*P_PAD)

    zf_gath = lax.dot_general(                              # (1, 2*P_PAD) f32
        zf.astype(jnp.bfloat16), onehot,
        (((1,), (0,)), ((), ())),
        preferred_element_type=jnp.float32)

    zf_i = zf_gath[:, :P_PAD]                               # Zf[idx_i]
    zf_j = zf_gath[:, P_PAD:]                               # Zf[idx_j]

    # z = Zf ** softplus(_apow), computed per-pair after the gather
    z_all = jnp.power(zf_gath, apow)                        # (1, 2*P_PAD)
    a = (z_all[:, :P_PAD] + z_all[:, P_PAD:]) * adiv        # (1, P_PAD)

    # ---- batched exponentials: one (4, P_PAD) EUP push -----------------------
    ar = a * rij                                            # (1, P_PAD)
    ex = jnp.exp(-a_col * ar)                               # (4, P_PAD)
    f = jnp.sum(c_col * ex, axis=0, keepdims=True) * cut    # (1, P_PAD)

    zizj = zf_i * zf_j
    # padded pairs: cutoff == 0 -> f == 0 -> e_pair == 0; rij padded with 1.0
    # keeps the reciprocal finite, so no explicit mask is needed.
    e_pair = kehalf * f * zizj * pl.reciprocal(rij, approx=False)   # (1, P_PAD)

    # ---- scatter-add (index_add_ over idx_i) via MXU, kept in f32 -----------
    onehot_i = onehot[:, :P_PAD].astype(jnp.float32)        # (N_PAD, P_PAD)
    out_ref[...] = lax.dot_general(
        e_pair, onehot_i,
        (((1,), (1,)), ((), ())),
        preferred_element_type=jnp.float32)                 # (1, N_PAD)


# ----------------------------------------------------------------------------
# Parameter setup (runs once, hoisted out of the per-call path)
# ----------------------------------------------------------------------------
def make_params():
    """Deterministic raw parameters, matching reset_parameters()."""
    raw = {
        "_adiv": softplus_inverse(1.0 / (0.8854 * A0)),
        "_apow": softplus_inverse(0.23),
        "_c1": softplus_inverse(0.1818),
        "_c2": softplus_inverse(0.5099),
        "_c3": softplus_inverse(0.2802),
        "_c4": softplus_inverse(0.02817),
        "_a1": softplus_inverse(3.2),
        "_a2": softplus_inverse(0.9423),
        "_a3": softplus_inverse(0.4028),
        "_a4": softplus_inverse(0.2016),
    }
    return {k: jnp.asarray(v, jnp.float32) for k, v in raw.items()}


def make_zbl_coeffs(raw_params):
    """Run the softplus / normalization chain ONCE and pack kernel inputs."""
    apow = softplus(raw_params["_apow"])
    adiv = softplus(raw_params["_adiv"])
    a1 = softplus(raw_params["_a1"])
    a2 = softplus(raw_params["_a2"])
    a3 = softplus(raw_params["_a3"])
    a4 = softplus(raw_params["_a4"])
    c1 = softplus(raw_params["_c1"])
    c2 = softplus(raw_params["_c2"])
    c3 = softplus(raw_params["_c3"])
    c4 = softplus(raw_params["_c4"])
    csum = c1 + c2 + c3 + c4
    scalars = jnp.stack([apow, adiv, jnp.float32(KEHALF),
                         jnp.float32(0.0)]).astype(jnp.float32)        # SMEM f32[4]
    a_col = jnp.stack([a1, a2, a3, a4]).reshape(4, 1).astype(jnp.float32)
    c_col = (jnp.stack([c1, c2, c3, c4]) / csum).reshape(4, 1).astype(jnp.float32)
    return scalars, a_col, c_col


# ----------------------------------------------------------------------------
# Wrappers
# ----------------------------------------------------------------------------
@jax.jit
def _zbl_forward_batched(Zf, rij, cutoff_values, idx_i, idx_j,
                         scalars, a_col, c_col):
    B, N = Zf.shape
    P = rij.shape[1]

    # pad to kernel layout (safe padding: Zf/rij -> 1.0, cutoff -> 0.0, idx -> 0)
    zf_p = jnp.ones((B, 1, N_PAD), jnp.float32).at[:, 0, :N].set(
        Zf.astype(jnp.float32))
    rij_p = jnp.ones((B, 1, P_PAD), jnp.float32).at[:, 0, :P].set(
        rij.astype(jnp.float32))
    cut_p = jnp.zeros((B, 1, P_PAD), jnp.float32).at[:, 0, :P].set(
        cutoff_values.astype(jnp.float32))
    idx_p = (jnp.zeros((B, 1, 2 * P_PAD), jnp.int32)
             .at[:, 0, :P].set(idx_i.astype(jnp.int32))
             .at[:, 0, P_PAD:P_PAD + P].set(idx_j.astype(jnp.int32)))

    out = pl.pallas_call(
        _zbl_kernel,
        out_shape=jax.ShapeDtypeStruct((B, 1, N_PAD), jnp.float32),
        grid_spec=pltpu.PrefetchScalarGridSpec(
            num_scalar_prefetch=0,
            grid=(B,),
            in_specs=[
                pl.BlockSpec(memory_space=pltpu.MemorySpace.SMEM),      # scalars
                pl.BlockSpec((4, 1), lambda b: (0, 0)),                  # a_col
                pl.BlockSpec((4, 1), lambda b: (0, 0)),                  # c_col
                pl.BlockSpec((pl.Squeezed(), 1, N_PAD),
                             lambda b: (b, 0, 0)),                       # Zf
                pl.BlockSpec((pl.Squeezed(), 1, P_PAD),
                             lambda b: (b, 0, 0)),                       # rij
                pl.BlockSpec((pl.Squeezed(), 1, P_PAD),
                             lambda b: (b, 0, 0)),                       # cutoff
                pl.BlockSpec((pl.Squeezed(), 1, 2 * P_PAD),
                             lambda b: (b, 0, 0)),                       # idx_i|idx_j
            ],
            out_specs=pl.BlockSpec((pl.Squeezed(), 1, N_PAD),
                                   lambda b: (b, 0, 0)),
        ),
        compiler_params=pltpu.CompilerParams(
            dimension_semantics=("parallel",)),
    )(scalars, a_col, c_col, zf_p, rij_p, cut_p, idx_p)

    return out[:, 0, :N]


def zbl_repulsion_energy_batched(Zf, rij, cutoff_values, idx_i, idx_j, coeffs):
    """Batched forward. Zf: (B, N); rij/cutoff/idx_i/idx_j: (B, P). Returns (B, N)."""
    B, N = Zf.shape
    P = rij.shape[1]
    assert N <= N_PAD and P <= P_PAD, "increase N_PAD / P_PAD"
    scalars, a_col, c_col = coeffs
    return _zbl_forward_batched(Zf, rij, cutoff_values, idx_i, idx_j,
                                scalars, a_col, c_col)


def zbl_repulsion_energy(N, Zf, rij, cutoff_values, idx_i, idx_j, coeffs):
    """Single-system forward matching the PyTorch module signature. Returns e [N]."""
    e = zbl_repulsion_energy_batched(Zf[None, :], rij[None, :],
                                     cutoff_values[None, :],
                                     idx_i[None, :], idx_j[None, :], coeffs)
    return e[0, :N]


# ----------------------------------------------------------------------------
# Pure-JAX reference (mirrors the PyTorch forward)
# ----------------------------------------------------------------------------
def zbl_reference(N, Zf, rij, cutoff_values, idx_i, idx_j, raw_params):
    apow = softplus(raw_params["_apow"])
    adiv = softplus(raw_params["_adiv"])
    a1 = softplus(raw_params["_a1"])
    a2 = softplus(raw_params["_a2"])
    a3 = softplus(raw_params["_a3"])
    a4 = softplus(raw_params["_a4"])
    c1 = softplus(raw_params["_c1"])
    c2 = softplus(raw_params["_c2"])
    c3 = softplus(raw_params["_c3"])
    c4 = softplus(raw_params["_c4"])
    csum = c1 + c2 + c3 + c4
    c1, c2, c3, c4 = c1 / csum, c2 / csum, c3 / csum, c4 / csum

    z = Zf ** apow
    a = (z[idx_i] + z[idx_j]) * adiv
    zizj = Zf[idx_i] * Zf[idx_j]
    f = (c1 * jnp.exp(-a1 * a * rij) + c2 * jnp.exp(-a2 * a * rij)
         + c3 * jnp.exp(-a3 * a * rij) + c4 * jnp.exp(-a4 * a * rij)) * cutoff_values
    contrib = KEHALF * f * zizj / rij
    return jax.ops.segment_sum(contrib, idx_i, num_segments=N)


if __name__ == "__main__":
    key = jax.random.PRNGKey(0)
    B = 4   # batch of systems (grid axis, "parallel")
    N = 8   # atoms per system

    # all ordered pairs i != j (each pair appears as ij and ji)
    ii, jj = jnp.meshgrid(jnp.arange(N), jnp.arange(N), indexing="ij")
    sel = ii != jj
    idx_i1 = ii[sel].astype(jnp.int32)
    idx_j1 = jj[sel].astype(jnp.int32)
    P = int(idx_i1.shape[0])  # 56 pairs per system

    idx_i = jnp.tile(idx_i1[None, :], (B, 1))
    idx_j = jnp.tile(idx_j1[None, :], (B, 1))

    k1, k2, k3 = jax.random.split(key, 3)
    Zf = jax.random.randint(k1, (B, N), 1, 10).astype(jnp.float32)         # nuclear charges
    rij = jax.random.uniform(k2, (B, P), jnp.float32, 0.7, 3.0)            # distances
    cutoff_values = jax.random.uniform(k3, (B, P), jnp.float32, 0.0, 1.0)  # cutoff fn values

    raw_params = make_params()
    coeffs = make_zbl_coeffs(raw_params)   # parameter glue runs once, not per call

    # batched kernel call (one pallas_call, grid over systems)
    e_kernel = zbl_repulsion_energy_batched(Zf, rij, cutoff_values, idx_i, idx_j, coeffs)
    e_kernel = jax.block_until_ready(e_kernel)

    e_ref = jax.vmap(
        lambda z, r, c, i, j: zbl_reference(N, z, r, c, i, j, raw_params)
    )(Zf, rij, cutoff_values, idx_i, idx_j)

    np.testing.assert_allclose(np.asarray(e_kernel), np.asarray(e_ref),
                               rtol=1e-5, atol=1e-5)

    # also exercise the single-system wrapper (original PyTorch forward signature)
    e_single = zbl_repulsion_energy(N, Zf[0], rij[0], cutoff_values[0],
                                    idx_i[0], idx_j[0], coeffs)
    e_single = jax.block_until_ready(e_single)
    np.testing.assert_allclose(np.asarray(e_single), np.asarray(e_ref[0]),
                               rtol=1e-5, atol=1e-5)

    print("KERNEL_OK")
</pallas_src>

<mosaic_0001>
module attributes {stable_mosaic.version = 11 : i64} {
  func.func @_zbl_kernel(%arg0: i32, %arg1: memref<4xf32, #tpu.memory_space<smem>>, %arg2: memref<4x1xf32, #tpu.memory_space<vmem>>, %arg3: memref<4x1xf32, #tpu.memory_space<vmem>>, %arg4: memref<1x1x128xf32, #tpu.memory_space<vmem>>, %arg5: memref<1x1x128xf32, #tpu.memory_space<vmem>>, %arg6: memref<1x1x128xf32, #tpu.memory_space<vmem>>, %arg7: memref<1x1x256xi32, #tpu.memory_space<vmem>>, %arg8: memref<1x1x128xf32, #tpu.memory_space<vmem>>) attributes {dimension_semantics = [#tpu.dimension_semantics<parallel>], iteration_bounds = array<i64: 4>, scalar_prefetch = 0 : i64, scratch_operands = 0 : i64, tpu.core_type = #tpu.core_type<tc>, window_params = [{transform_indices = @transform_0, window_bounds = array<i64: 4>}, {pipeline_mode = #tpu.pipeline_mode<synchronous>, transform_indices = @transform_1, window_bounds = array<i64: 4, 1>}, {pipeline_mode = #tpu.pipeline_mode<synchronous>, transform_indices = @transform_2, window_bounds = array<i64: 4, 1>}, {transform_indices = @transform_3, window_bounds = array<i64: 1, 1, 128>}, {transform_indices = @transform_4, window_bounds = array<i64: 1, 1, 128>}, {transform_indices = @transform_5, window_bounds = array<i64: 1, 1, 128>}, {transform_indices = @transform_6, window_bounds = array<i64: 1, 1, 256>}, {transform_indices = @transform_7, window_bounds = array<i64: 1, 1, 128>}]} {
    %c0 = arith.constant 0 : index
    %0 = memref.load %arg1[%c0] : memref<4xf32, #tpu.memory_space<smem>>
    %c1 = arith.constant 1 : index
    %1 = memref.load %arg1[%c1] : memref<4xf32, #tpu.memory_space<smem>>
    %c2 = arith.constant 2 : index
    %2 = memref.load %arg1[%c2] : memref<4xf32, #tpu.memory_space<smem>>
    %c0_0 = arith.constant 0 : index
    %c0_1 = arith.constant 0 : index
    %c0_2 = arith.constant 0 : index
    %3 = vector.load %arg4[%c0_0, %c0_1, %c0_2] : memref<1x1x128xf32, #tpu.memory_space<vmem>>, vector<1x1x128xf32>
    %4 = vector.shape_cast %3 : vector<1x1x128xf32> to vector<1x128xf32>
    %c0_3 = arith.constant 0 : index
    %c0_4 = arith.constant 0 : index
    %c0_5 = arith.constant 0 : index
    %5 = vector.load %arg5[%c0_3, %c0_4, %c0_5] : memref<1x1x128xf32, #tpu.memory_space<vmem>>, vector<1x1x128xf32>
    %6 = vector.shape_cast %5 : vector<1x1x128xf32> to vector<1x128xf32>
    %c0_6 = arith.constant 0 : index
    %c0_7 = arith.constant 0 : index
    %c0_8 = arith.constant 0 : index
    %7 = vector.load %arg6[%c0_6, %c0_7, %c0_8] : memref<1x1x128xf32, #tpu.memory_space<vmem>>, vector<1x1x128xf32>
    %8 = vector.shape_cast %7 : vector<1x1x128xf32> to vector<1x128xf32>
    %c0_9 = arith.constant 0 : index
    %c0_10 = arith.constant 0 : index
    %c0_11 = arith.constant 0 : index
    %9 = vector.load %arg7[%c0_9, %c0_10, %c0_11] : memref<1x1x256xi32, #tpu.memory_space<vmem>>, vector<1x1x256xi32>
    %10 = vector.shape_cast %9 : vector<1x1x256xi32> to vector<1x256xi32>
    %c0_12 = arith.constant 0 : index
    %c0_13 = arith.constant 0 : index
    %11 = vector.load %arg2[%c0_12, %c0_13] : memref<4x1xf32, #tpu.memory_space<vmem>>, vector<4x1xf32>
    %c0_14 = arith.constant 0 : index
    %c0_15 = arith.constant 0 : index
    %12 = vector.load %arg3[%c0_14, %c0_15] : memref<4x1xf32, #tpu.memory_space<vmem>>, vector<4x1xf32>
    %13 = tpu.iota {dimensions = array<i32: 0>} : vector<128x256xi32>
    %14 = vector.broadcast %10 : vector<1x256xi32> to vector<128x256xi32>
    %15 = arith.cmpi eq, %13, %14 : vector<128x256xi32>
    %16 = arith.extui %15 : vector<128x256xi1> to vector<128x256xi32>
    %17 = arith.sitofp %16 : vector<128x256xi32> to vector<128x256xf32>
    %18 = arith.truncf %17 : vector<128x256xf32> to vector<128x256xbf16>
    %19 = arith.truncf %4 : vector<1x128xf32> to vector<1x128xbf16>
    %cst = arith.constant dense<0.000000e+00> : vector<1x256xf32>
    %20 = tpu.matmul %19, %18, %cst {dimension_numbers = #tpu.dot_dimension_numbers<[1], [0], [0], [1], [0, 0, 1, 1], [], []>} : vector<1x128xbf16>, vector<128x256xbf16>, vector<1x256xf32> -> vector<1x256xf32>
    %21 = vector.extract_strided_slice %20 {offsets = [0, 0], sizes = [1, 128], strides = [1, 1]} : vector<1x256xf32> to vector<1x128xf32>
    %22 = vector.extract_strided_slice %20 {offsets = [0, 128], sizes = [1, 128], strides = [1, 1]} : vector<1x256xf32> to vector<1x128xf32>
    %23 = vector.broadcast %0 : f32 to vector<1x256xf32>
    %24 = math.powf %20, %23 : vector<1x256xf32>
    %25 = vector.extract_strided_slice %24 {offsets = [0, 0], sizes = [1, 128], strides = [1, 1]} : vector<1x256xf32> to vector<1x128xf32>
    %26 = vector.extract_strided_slice %24 {offsets = [0, 128], sizes = [1, 128], strides = [1, 1]} : vector<1x256xf32> to vector<1x128xf32>
    %27 = arith.addf %25, %26 : vector<1x128xf32>
    %28 = vector.broadcast %1 : f32 to vector<1x128xf32>
    %29 = arith.mulf %27, %28 : vector<1x128xf32>
    %30 = arith.mulf %29, %6 : vector<1x128xf32>
    %cst_16 = arith.constant 0.000000e+00 : f32
    %31 = vector.broadcast %cst_16 : f32 to vector<4x1xf32>
    %32 = arith.subf %31, %11 : vector<4x1xf32>
    %33 = vector.broadcast %32 : vector<4x1xf32> to vector<4x128xf32>
    %34 = vector.broadcast %30 : vector<1x128xf32> to vector<4x128xf32>
    %35 = arith.mulf %33, %34 : vector<4x128xf32>
    %36 = math.exp %35 : vector<4x128xf32>
    %37 = vector.broadcast %12 : vector<4x1xf32> to vector<4x128xf32>
    %38 = arith.mulf %37, %36 : vector<4x128xf32>
    %cst_17 = arith.constant dense<0.000000e+00> : vector<128xf32>
    %39 = vector.multi_reduction <add>, %38, %cst_17 [0] : vector<4x128xf32> to vector<128xf32>
    %40 = vector.shape_cast %39 : vector<128xf32> to vector<1x128xf32>
    %41 = arith.mulf %40, %8 : vector<1x128xf32>
    %42 = arith.mulf %21, %22 : vector<1x128xf32>
    %43 = vector.broadcast %2 : f32 to vector<1x128xf32>
    %44 = arith.mulf %43, %41 : vector<1x128xf32>
    %45 = arith.mulf %44, %42 : vector<1x128xf32>
    %46 = tpu.reciprocal %6 : vector<1x128xf32> -> vector<1x128xf32>
    %47 = arith.mulf %45, %46 : vector<1x128xf32>
    %48 = vector.extract_strided_slice %18 {offsets = [0, 0], sizes = [128, 128], strides = [1, 1]} : vector<128x256xbf16> to vector<128x128xbf16>
    %49 = arith.extf %48 : vector<128x128xbf16> to vector<128x128xf32>
    %cst_18 = arith.constant dense<0.000000e+00> : vector<1x128xf32>
    %50 = tpu.matmul %47, %49, %cst_18 {dimension_numbers = #tpu.dot_dimension_numbers<[1], [1], [0], [0], [0, 0, 1, 0], [], []>} : vector<1x128xf32>, vector<128x128xf32>, vector<1x128xf32> -> vector<1x128xf32>
    %c0_19 = arith.constant 0 : index
    %c0_20 = arith.constant 0 : index
    %c0_21 = arith.constant 0 : index
    %51 = vector.load %arg8[%c0_19, %c0_20, %c0_21] : memref<1x1x128xf32, #tpu.memory_space<vmem>>, vector<1x1x128xf32>
    %52 = vector.shape_cast %51 : vector<1x1x128xf32> to vector<1x128xf32>
    %53 = vector.shape_cast %50 : vector<1x128xf32> to vector<1x1x128xf32>
    tpu.vector_store %arg8[%c0_19, %c0_20, %c0_21], %53 {strides = array<i32>} : memref<1x1x128xf32, #tpu.memory_space<vmem>>, vector<1x1x128xf32>,
    return
  }
  func.func @transform_0(%arg0: i32) -> i32 {
    %c0_i32 = arith.constant 0 : i32
    %c0_i32_0 = arith.constant 0 : i32
    return %c0_i32 : i32
  }
  func.func @transform_1(%arg0: i32) -> (i32, i32) {
    %c0_i32 = arith.constant 0 : i32
    %c0_i32_0 = arith.constant 0 : i32
    %c0_i32_1 = arith.constant 0 : i32
    return %c0_i32, %c0_i32_0 : i32, i32
  }
  func.func @transform_2(%arg0: i32) -> (i32, i32) {
    %c0_i32 = arith.constant 0 : i32
    %c0_i32_0 = arith.constant 0 : i32
    %c0_i32_1 = arith.constant 0 : i32
    return %c0_i32, %c0_i32_0 : i32, i32
  }
  func.func @transform_3(%arg0: i32) -> (i32, i32, i32) {
    %c0_i32 = arith.constant 0 : i32
    %c0_i32_0 = arith.constant 0 : i32
    %c0_i32_1 = arith.constant 0 : i32
    return %arg0, %c0_i32, %c0_i32_0 : i32, i32, i32
  }
  func.func @transform_4(%arg0: i32) -> (i32, i32, i32) {
    %c0_i32 = arith.constant 0 : i32
    %c0_i32_0 = arith.constant 0 : i32
    %c0_i32_1 = arith.constant 0 : i32
    return %arg0, %c0_i32, %c0_i32_0 : i32, i32, i32
  }
  func.func @transform_5(%arg0: i32) -> (i32, i32, i32) {
    %c0_i32 = arith.constant 0 : i32
    %c0_i32_0 = arith.constant 0 : i32
    %c0_i32_1 = arith.constant 0 : i32
    return %arg0, %c0_i32, %c0_i32_0 : i32, i32, i32
  }
  func.func @transform_6(%arg0: i32) -> (i32, i32, i32) {
    %c0_i32 = arith.constant 0 : i32
    %c0_i32_0 = arith.constant 0 : i32
    %c0_i32_1 = arith.constant 0 : i32
    return %arg0, %c0_i32, %c0_i32_0 : i32, i32, i32
  }
  func.func @transform_7(%arg0: i32) -> (i32, i32, i32) {
    %c0_i32 = arith.constant 0 : i32
    %c0_i32_0 = arith.constant 0 : i32
    %c0_i32_1 = arith.constant 0 : i32
    return %arg0, %c0_i32, %c0_i32_0 : i32, i32, i32
  }
}

</mosaic_0001>

<bundles_post_ra>
// kernel: _zbl_forward_batched.1
= control target key start
LH: loop header
LB: loop body
LE: loop exit
PB: predicated region body
PF: predicated region fallthrough
CT: control target
= control target key end

     0   :  { %12 = vsyncpa [#allocation4], 0  ;;  %s1682_s0 = inlined_call_operand.vmem [shape: f32[4], index: 0, kind: input, shape index: {}]   ;;  %s1683_s1 = inlined_call_operand.vmem [shape: f32[4,1], index: 1, kind: input, shape index: {}]   ;;  %s1684_s2 = inlined_call_operand.vmem [shape: f32[4,1], index: 2, kind: input, shape index: {}]   ;;  %s1685_s3 = inlined_call_operand.vmem [shape: f32[4,1,128], index: 3, kind: input, shape index: {}]   ;;  %s1686_s4 = inlined_call_operand.vmem [shape: f32[4,1,128], index: 4, kind: input, shape index: {}]   ;;  %s1687_s5 = inlined_call_operand.vmem [shape: f32[4,1,128], index: 5, kind: input, shape index: {}]   ;;  %s1688_s6 = inlined_call_operand.vmem [shape: s32[4,1,256], index: 6, kind: input, shape index: {}]   ;;  %s1689_s7 = inlined_call_operand.hbm [shape: f32[4,1,128], index: 7, kind: output, shape index: {}]  }
   0x1   :  { %13 = vsyncpa [#allocation3], 0 }
   0x2   :  { %15 = vsyncpa [#allocation3 + $0x1], 0  ;;  %s1225_s24 = smov 0   ;;  %s1227_s25 = smov 0  }
   0x3   :  { %s1229_s26 = smov 0   ;;  %s1231_s27 = smov 0  }
   0x4 LB: > { %s1246_s28 = sadd.s32 4294967295, %s1175_s27   ;;  %s753_s29 = sadd.s32 4294967294, %s1175_s27   ;;  %s1175_s27 = sphi %s1231_s27, %s1733_s27   ;;  %s1171_s26 = sphi %s1229_s26, %s1732_s26   ;;  %s1167_s25 = sphi %s1227_s25, %s1731_s25   ;;  %s1163_s24 = sphi %s1225_s24, %s1730_s24  }
   0x5   : > { %s1250_s30 = sadd.s32 1, %s1175_s27   ;;  %s195_s8 = sadd.s32 1, %s1171_s26 }
   0x6   : > { %s192_s9 = ssub.s32 %s1175_s27, %s1250_s30  ;;  %p205_p0 = scmp.ne.s32.totalorder %s1171_s26, %s1167_s25 }
   0x7   : > { %p193_p1 = scmp.eq.s32.totalorder %s192_s9, 0  ;;  %p206_p2 = scmp.eq.s32.totalorder %s1246_s28, 3 }
   0x8   : > { %p211_p3 = scmp.ne.s32.totalorder %s1167_s25, %s1163_s24  ;;  %p212_p4 = scmp.eq.s32.totalorder %s753_s29, 3 }
   0x9   : > { %s1261_s10 = scalar_select %p193_p1, %s1171_s26, %s195_s8  }
   0xa   : > { %p1263_p5 = por %p206_p2, %p205_p0  ;;  %p1267_p6 = por %p212_p4, %p211_p3 }
   0xb   : > { %p754_p7 = scmp.ge.s32.totalorder %s1175_s27, 1  ;;  %p219_p8 = scmp.lt.s32.totalorder %s1175_s27, 5 }
   0xc   : > { %p1039_p9 = scmp.eq.s32.totalorder %s1246_s28, 0  ;;  %s232_s16 = sshll.u32 %s1682_s0, 4  ;;  %s233_s16 = int_to_ptr.vmem [resolvable:$true] %s232_s16 }
   0xd   : > { %p1274_p10 = pnand %p754_p7, %p219_p8  ;;  %s1094_s17 = scalar_lea.vmem %s233_s16, 16 }
   0xe   : > { %p1095_p13 = scmp.ne.s32.totalorder %s233_s16, %s1094_s17  ;;  %p1102_p3 = scmp.lt.s32.totalorder %s233_s16, %s233_s16 }
   0xf   : > { %p1031_p11 = pneg %p1274_p10  ;;  %p1103_p4 = scmp.lt.s32.totalorder %s1094_s17, %s1094_s17 }
  0x11   : > { %p1032_p12 = pnand %p1039_p9, %p1031_p11  ;;  %p1104_p7 = por %p1103_p4, %p1102_p3 }
  0x13   : > { %p1096_p0 = pneg %p1032_p12 }
  0x15   : > { %p1097_p1 = pnand %p1096_p0, %p1095_p13 }
  0x17   : > { %p1098_p2 = pneg %p1097_p1 }
  0x19   : > { %p1105_p8 = pnand %p1104_p7, %p1098_p2 }
  0x1b   : > { %1108 = shalt.err (!%p1105_p8)
}
  0x1c   : > { %s1177_s18 = smov [#allocation2]   ;;  %276 = sbr.rel (%p1274_p10) target bundleno = 602 (0x25a), region = 48 }
  0x1d   : > { %1034 = dma.vmem_to_smem (!%p1032_p12), %s233_s16, 16, %s1177_s18, [#allocation4]  }
  0x23   : > { %1154 = dma.done.wait (%p1039_p9), [#allocation4], 16  }
  0x24   : > { %1156 = vsyncadd (%p1039_p9), [#allocation4], 4294967280 }
  0x25   : > { %282 = sfence }
  0x26   : > { %p316_p11 = scmp.lt.s32.totalorder %s1246_s28, 3  ;;  %v339_v0 = vlaneseq  ;;  %v1178_v1 = vmov 0   ;;  %v337_v2 = vld [vmem:[%s1683_s1] sm:$0xf]  ;;  %v1179_v16 = vmov 1.0|1.0  }
  0x27   : > { %509 = vmatprep.mubr.bf16.mxu0 %v1178_v1  ;;  %1081 = vset.pattern.permute.xlu0 %v1178_v1  ;;  %v525_v4 = vsub.f32 0.0, %v337_v2  ;;  %v338_v8 = vld [vmem:[%s1684_s2] sm:$0xf]  ;;  %v1180_v37 = vmov 0.0|0.0   ;;  %v1182_v38 = vmov 0.0   ;;  %s330_s17 = sld [smem:[#allocation2]] }
  0x28   : > { %s1298_s21 = scalar_select %p316_p11, %s1246_s28, 3  ;;  %v1300_v3 = vshrl.u32 %v339_v0, 7  ;;  %897 = vmatprep.subr.bf16.mxu1 %v1180_v37  ;;  %v1183_v58 = vmov 2139095040  }
  0x29   : > { %528 = vperm.xlu0 %1081, %v525_v4   ;;  %s1572_s18 = sld [smem:[#allocation2 + $0x1]]  ;;  %s761_s23 = sld [smem:[#allocation2 + $0x2]] }
  0x2a   : > { %s759_s22 = sshll.u32 %s1298_s21, 1  ;;  %v362_v5 = vsub.s32 1, %v1300_v3  ;;  %v358_v6 = vsub.s32 0, %v1300_v3  ;;  %v341_v7 = vadd.s32 8, %v1300_v3  ;;  %v342_v10 = vadd.s32 16, %v1300_v3  ;;  %s318_s16 = scalar_lea.vmem %s1685_s3, %s1298_s21 }
  0x2b   : > { %s328_s8 = scalar_lea.vmem %s1688_s6, %s759_s22  ;;  %v343_v11 = vadd.s32 24, %v1300_v3  ;;  %v344_v14 = vadd.s32 32, %v1300_v3  ;;  %v345_v15 = vadd.s32 40, %v1300_v3  ;;  %v346_v18 = vadd.s32 48, %v1300_v3  ;;  %v333_v34 = vld [vmem:[%s318_s16] sm:$0x1]  ;;  %s321_s22 = scalar_lea.vmem %s1686_s4, %s1298_s21 }
  0x2c   : > { %v336_v9 = vld [vmem:[%s328_s8] sm:$0x3]  ;;  %v347_v19 = vadd.s32 56, %v1300_v3  ;;  %v348_v21 = vadd.s32 64, %v1300_v3  ;;  %v349_v22 = vadd.s32 72, %v1300_v3  ;;  %v350_v24 = vadd.s32 80, %v1300_v3  ;;  %s324_s9 = scalar_lea.vmem %s1687_s5, %s1298_s21 }
  0x2d   : > { %v1314_v12 = vrot.slane %v336_v9, %v362_v5  ;;  %v1318_v13 = vrot.slane %v336_v9, %v358_v6  ;;  %540 = vperm.xlu0 %1081, %v338_v8   ;;  %v351_v25 = vadd.s32 88, %v1300_v3  ;;  %v352_v27 = vadd.s32 96, %v1300_v3  ;;  %s314_s13 = sand.u32 1, %s1167_s25   ;;  %s842_s16 = sshll.u32 %s1246_s28, 4 }
  0x2e   : > { %v353_v28 = vadd.s32 104, %v1300_v3  ;;  %v354_v30 = vadd.s32 112, %v1300_v3  ;;  %v355_v31 = vadd.s32 120, %v1300_v3  ;;  %v476_v36 = vpack.c.bf16 %v333_v34, %v333_v34  ;;  %v334_v34 = vld [vmem:[%s321_s22] sm:$0x1]  ;;  %s315_s14 = scalar_lea.vmem [#allocation5], %s314_s13 }
  0x2f   : > { %vm365_vm0 = vcmp.eq.s32.totalorder %v1300_v3, %v1314_v12  ;;  %vm367_vm1 = vcmp.eq.s32.totalorder %v341_v7, %v1314_v12  ;;  %vm364_vm2 = vcmp.eq.s32.totalorder %v1300_v3, %v1318_v13  ;;  %vm366_vm3 = vcmp.eq.s32.totalorder %v341_v7, %v1318_v13  ;;  %s659_s15 = sshll.u32 %s315_s14, 4  ;;  %s647_s19 = scalar_lea.sflag [#allocation3], %s314_s13  ;;  %s1637_s15 = int_to_ptr.vmem [resolvable:$true] %s659_s15 }
  0x30   : > { %vm794_vm4 = vmpackc.low %vm367_vm1, %vm365_vm0  ;;  %vm369_vm5 = vcmp.eq.s32.totalorder %v342_v10, %v1314_v12  ;;  %vm371_vm6 = vcmp.eq.s32.totalorder %v343_v11, %v1314_v12  ;;  %vm368_vm7 = vcmp.eq.s32.totalorder %v342_v10, %v1318_v13  ;;  %vm370_vm8 = vcmp.eq.s32.totalorder %v343_v11, %v1318_v13  ;;  %s1109_s20 = scalar_lea.vmem %s1637_s15, 16  ;;  %s1184_s28 = smov [#allocation5]  }
  0x31   : > { %795 = vmatprep.subr.msk.bf16.mxu0 %vm794_vm4, %v1179_v16  ;;  %vm1333_vm9 = vmpackc.low %vm366_vm3, %vm364_vm2  ;;  %vm373_vm10 = vcmp.eq.s32.totalorder %v344_v14, %v1314_v12  ;;  %vm375_vm11 = vcmp.eq.s32.totalorder %v345_v15, %v1314_v12  ;;  %vm372_vm15 = vcmp.eq.s32.totalorder %v344_v14, %v1318_v13  ;;  %vm374_vm0 = vcmp.eq.s32.totalorder %v345_v15, %v1318_v13  ;;  %p1110_p9 = scmp.ne.s32.totalorder %s1637_s15, %s1109_s20  ;;  %s1113_s22 = sshll.u32 %s1184_s28, 4  ;;  %s1114_s22 = int_to_ptr.vmem [resolvable:$false] %s1113_s22 }
  0x32   : > { %797 = vmatpush1.bf16.msk.msra.mxu0 %vm1333_vm9, %v1179_v16  ;;  %vm798_vm12 = vmpackc.low %vm371_vm6, %vm369_vm5  ;;  %vm377_vm1 = vcmp.eq.s32.totalorder %v346_v18, %v1314_v12  ;;  %vm379_vm2 = vcmp.eq.s32.totalorder %v347_v19, %v1314_v12  ;;  %vm376_vm5 = vcmp.eq.s32.totalorder %v346_v18, %v1318_v13  ;;  %vm378_vm6 = vcmp.eq.s32.totalorder %v347_v19, %v1318_v13  ;;  %p1116_p13 = scmp.lt.s32.totalorder %s1637_s15, %s1114_s22 }
  0x33   : > { %799 = vmatprep.subr.msk.bf16.mxu0 %vm798_vm12, %v1179_v16  ;;  %vm1345_vm13 = vmpackc.low %vm370_vm8, %vm368_vm7  ;;  %vm381_vm7 = vcmp.eq.s32.totalorder %v348_v21, %v1314_v12  ;;  %vm383_vm8 = vcmp.eq.s32.totalorder %v349_v22, %v1314_v12  ;;  %vm380_vm12 = vcmp.eq.s32.totalorder %v348_v21, %v1318_v13  ;;  %899 = vmatpush3.bf16.xpose.msk.msra.mxu1 %vm1333_vm9, %v1179_v16  ;;  %vm1181_vm9 = vmmov 0   ;;  %p1111_p10 = pnand %p1110_p9, %p1263_p5 }
  0x34   : > { %vm802_vm14 = vmpackc.low %vm375_vm11, %vm373_vm10  ;;  %900 = vmatprep.subr.bf16.mxu1 %v1180_v37  ;;  %894 = vmatprep.mubr.msk.f32.mxu1 %vm1181_vm9, %v1182_v38  ;;  %v1458_v39 = vstv %s330_s17  ;;  %v522_v32 = vstv %s1572_s18  ;;  %s1642_s18 = scalar_lea.hbm %s1689_s7, %s842_s16 }
  0x35   : > { %vm1359_vm3 = vmpackc.low %vm374_vm0, %vm372_vm15  ;;  %vm385_vm15 = vcmp.eq.s32.totalorder %v350_v24, %v1314_v12  ;;  %vm387_vm0 = vcmp.eq.s32.totalorder %v351_v25, %v1314_v12  ;;  %v1461_v40 = vand.u32 2147483647, %v1458_v39  ;;  %v930_v48 = vtrunc.f32 %v1458_v39  ;;  %p1112_p12 = pneg %p1111_p10 }
  0x36   : > { %801 = vmatpush1.bf16.msk.msra.mxu0 %vm1345_vm13, %v1179_v16  ;;  %vm806_vm4 = vmpackc.low %vm379_vm2, %vm377_vm1 }
  0x37   : > { %803 = vmatprep.subr.msk.bf16.mxu0 %vm802_vm14, %v1179_v16  ;;  %vm1373_vm10 = vmpackc.low %vm378_vm6, %vm376_vm5  ;;  %vm382_vm14 = vcmp.eq.s32.totalorder %v349_v22, %v1318_v13  ;;  %vm386_vm5 = vcmp.eq.s32.totalorder %v351_v25, %v1318_v13  ;;  %vm389_vm6 = vcmp.eq.s32.totalorder %v352_v27, %v1314_v12  ;;  %v934_v45 = vtrunc.f32 %v1461_v40 }
  0x38   : > { %vm810_vm11 = vmpackc.low %vm383_vm8, %vm381_vm7  ;;  %vm391_vm7 = vcmp.eq.s32.totalorder %v353_v28, %v1314_v12 }
  0x39   : > { %vm1387_vm1 = vmpackc.low %vm382_vm14, %vm380_vm12  ;;  %vm388_vm12 = vcmp.eq.s32.totalorder %v352_v27, %v1318_v13  ;;  %vm390_vm14 = vcmp.eq.s32.totalorder %v353_v28, %v1318_v13  ;;  %v935_v49 = vcvt.f32.s32 %v934_v45 }
  0x3a   : > { %805 = vmatpush1.bf16.msk.msra.mxu0 %vm1359_vm3, %v1179_v16  ;;  %vm814_vm2 = vmpackc.low %vm387_vm0, %vm385_vm15  ;;  %vm393_vm15 = vcmp.eq.s32.totalorder %v354_v30, %v1314_v12  ;;  %vm395_vm0 = vcmp.eq.s32.totalorder %v355_v31, %v1314_v12 }
  0x3b   : > { %807 = vmatprep.subr.msk.bf16.mxu0 %vm806_vm4, %v1179_v16  ;;  %vm384_vm4 = vcmp.eq.s32.totalorder %v350_v24, %v1318_v13  ;;  %902 = vmatpush3.bf16.xpose.msk.msra.mxu1 %vm1345_vm13, %v1179_v16  ;;  %vm1690_vm13 = vcmp.eq.f32.partialorder %v1461_v40, 2139095040  ;;  %v936_v51 = vand.u32 1, %v935_v49 }
  0x3c   : > { %vm1401_vm8 = vmpackc.low %vm386_vm5, %vm384_vm4  ;;  %vm392_vm5 = vcmp.eq.s32.totalorder %v354_v30, %v1318_v13  ;;  %903 = vmatprep.subr.bf16.mxu1 %v1180_v37 }
  0x3d   : > { %vm822_vm4 = vmpackc.low %vm395_vm0, %vm393_vm15 }
  0x3e   : > { %809 = vmatpush1.bf16.msk.msra.mxu0 %vm1373_vm10, %v1179_v16 }
  0x3f   : > { %811 = vmatprep.subr.msk.bf16.mxu0 %vm810_vm11, %v1179_v16  ;;  %vm818_vm11 = vmpackc.low %vm391_vm7, %vm389_vm6  ;;  %vm394_vm6 = vcmp.eq.s32.totalorder %v355_v31, %v1318_v13 }
  0x40   : > { %vm1427_vm7 = vmpackc.low %vm394_vm6, %vm392_vm5 }
  0x42   : > { %813 = vmatpush1.bf16.msk.msra.mxu0 %vm1387_vm1, %v1179_v16 }
  0x43   : > { %815 = vmatprep.subr.msk.bf16.mxu0 %vm814_vm2, %v1179_v16  ;;  %vm1413_vm2 = vmpackc.low %vm390_vm14, %vm388_vm12  ;;  %905 = vmatpush3.bf16.xpose.msk.msra.mxu1 %vm1359_vm3, %v1179_v16  ;;  %vm931_vm3 = vcmp.ne.f32.partialorder %v1458_v39, %v930_v48  ;;  %vm933_vm12 = vcmp.lt.f32.partialorder %v1461_v40, 1266679808  ;;  %v335_v48 = vld [vmem:[%s324_s9] sm:$0x1] }
  0x44   : > { %906 = vmatprep.subr.bf16.mxu1 %v1180_v37 }
  0x46   : > { %817 = vmatpush1.bf16.msk.msra.mxu0 %vm1401_vm8, %v1179_v16 }
  0x47   : > { %819 = vmatprep.subr.msk.bf16.mxu0 %vm818_vm11, %v1179_v16  ;;  %vm929_vm11 = vcmp.lt.f32.partialorder %v1458_v39, 0 }
  0x48   : > { %v961_v59 = vsel %vm929_vm11, 0, %v1183_v58  ;;  %v949_v2 = vsel %vm929_vm11, 2139095040, %v1178_v1 }
  0x49   : > { %v962_v63 = vxor.u32 2147483648, %v961_v59 }
  0x4a   : > { %821 = vmatpush1.bf16.msk.msra.mxu0 %vm1413_vm2, %v1179_v16 }
  0x4b   : > { %823 = vmatprep.subr.msk.bf16.mxu0 %vm822_vm4, %v1179_v16  ;;  %908 = vmatpush3.bf16.xpose.msk.msra.mxu1 %vm1373_vm10, %v1179_v16  ;;  %vm1485_vm10 = vmor %vm931_vm3, %vm1690_vm13 }
  0x4c   : > { %909 = vmatprep.subr.bf16.mxu1 %v1180_v37 }
  0x4e   : > { %825 = vmatpush1.bf16.msk.msra.mxu0 %vm1427_vm7, %v1179_v16 }
  0x51   : > { %510 = vmatmul.mubr.bf16.vlgmr.msra.gmra.mrb[0].mxu0 %v476_v36 }
  0x53   : > { %911 = vmatpush3.bf16.xpose.msk.msra.mxu1 %vm1387_vm1, %v1179_v16  ;;  %vm937_vm1 = vcmp.eq.s32.totalorder %v936_v51, 1  ;;  %v554_v51 = vstv %s761_s23  ;;  %s1115_s23 = scalar_lea.vmem %s1114_s22, 32 }
  0x54   : > { %912 = vmatprep.subr.bf16.mxu1 %v1180_v37  ;;  %p1117_p0 = scmp.lt.s32.totalorder %s1115_s23, %s1109_s20 }
  0x56   : > { %p1118_p1 = por %p1117_p0, %p1116_p13 }
  0x58   : > { %p1119_p2 = pnand %p1118_p1, %p1112_p12 }
  0x5b   : > { %914 = vmatpush3.bf16.xpose.msk.msra.mxu1 %vm1401_vm8, %v1179_v16  ;;  %vm938_vm8 = vmneg %vm1485_vm10 }
  0x5c   : > { %915 = vmatprep.subr.bf16.mxu1 %v1180_v37  ;;  %vm939_vm14 = vmand %vm937_vm1, %vm938_vm8 }
  0x63   : > { %917 = vmatpush3.bf16.xpose.msk.msra.mxu1 %vm1413_vm2, %v1179_v16  ;;  %vm1497_vm2 = vmand %vm933_vm12, %vm939_vm14 }
  0x64   : > { %918 = vmatprep.subr.bf16.mxu1 %v1180_v37  ;;  %v963_v8 = vsel %vm1497_vm2, %v962_v63, %v961_v59 }
  0x6b   : > { %920 = vmatpush3.bf16.xpose.msk.msra.mxu1 %vm1427_vm7, %v1179_v16 }
  0xa8   : > { %v529_v38 = vpop.permute.xlu0 %528 }
 0x124   : > { %v1463_v41 = vpop.f32.mrb[0].mxu0 }
 0x125   : > { %v1465_v42 = vpop.f32.mrb[1].mxu0  ;;  %v1468_v43 = vand.u32 2147483647, %v1463_v41  ;;  %vm941_vm15 = vcmp.lt.f32.partialorder %v1463_v41, 0  ;;  %vm942_vm4 = vcmp.eq.f32.partialorder %v1463_v41, 0 }
 0x126   : > { %v515_v44 = vpop.f32.mrb[2].mxu0  ;;  %v1473_v47 = vand.u32 2147483647, %v1465_v42  ;;  %v1479_v50 = vmul.f32 %v1465_v42, %v1463_v41  ;;  %vm1508_vm5 = vmand %vm941_vm15, %vm1485_vm10  ;;  %vm994_vm3 = vcmp.eq.f32.partialorder %v1465_v42, 0  ;;  %vm993_vm12 = vcmp.lt.f32.partialorder %v1465_v42, 0 }
 0x127   : > { %v516_v46 = vpop.f32.mrb[3].mxu0  ;;  %1082 = vlog2.f32 %v1468_v43  ;;  %vm945_vm0 = vcmp.gt.f32.partialorder %v1468_v43, 1065353216  ;;  %vm1523_vm9 = vmand %vm929_vm11, %vm942_vm4  ;;  %vm996_vm13 = vcmp.lt.s32.totalorder %v1465_v42, 0  ;;  %v964_v18 = vsel %vm941_vm15, %v963_v8, %v961_v59  ;;  %v541_v44 = vpop.permute.xlu0 %540 }
 0x128   : > { %1084 = vlog2.f32 %v1473_v47  ;;  %vm997_vm6 = vcmp.gt.f32.partialorder %v1473_v47, 1065353216  ;;  %vm1515_vm7 = vmxor %vm929_vm11, %vm945_vm0  ;;  %vm943_vm0 = vcmp.eq.f32.partialorder %v1463_v41, 1065353216  ;;  %v1016_v25 = vsel %vm993_vm12, %v963_v8, %v961_v59 }
 0x129   : > { %vm1530_vm1 = vmxor %vm929_vm11, %vm997_vm6  ;;  %vm944_vm6 = vcmp.lt.s32.totalorder %v1463_v41, 0 }
 0x12a   : > { %vm956_vm8 = vmor %vm1523_vm9, %vm1515_vm7  ;;  %vm967_vm9 = vcmp.ne.f32.partialorder %v1458_v39, %v1458_v39 }
 0x12b   : > { %vm1546_vm14 = vmand %vm929_vm11, %vm994_vm3  ;;  %v957_v11 = vsel %vm956_vm8, 2139095040, %v1178_v1  ;;  %vm958_vm8 = vcmp.eq.f32.partialorder %v1463_v41, 3212836864  ;;  %vm966_vm11 = vcmp.ne.f32.partialorder %v1463_v41, %v1463_v41 }
 0x12c   : > { %vm1008_vm7 = vmor %vm1546_vm14, %vm1530_vm1  ;;  %v959_v17 = vsel %vm958_vm8, 1065353216, %v957_v11  ;;  %vm1018_vm1 = vcmp.ne.f32.partialorder %v1465_v42, %v1465_v42  ;;  %vm995_vm14 = vcmp.eq.f32.partialorder %v1465_v42, 1065353216  ;;  %vm1727_vm8 = vcmp.eq.f32.partialorder %v1458_v39, 1065353216 }
 0x12d   : > { %v1009_v15 = vsel %vm1008_vm7, 2139095040, %v1178_v1  ;;  %vm968_vm15 = vmor %vm966_vm11, %vm967_vm9  ;;  %vm1725_vm7 = vcmp.eq.f32.partialorder %v1458_v39, 0 }
 0x12e   : > { %vm1020_vm11 = vmor %vm1018_vm1, %vm967_vm9  ;;  %vm544_vm9 = vcmask 1043456  }
 0x131   : > { %v1083_v53 = vpop.eup %1082 }
 0x132   : > { %v923_v54 = vmul.f32 %v1083_v53, %v1458_v39  ;;  %v1085_v55 = vpop.eup %1084 }
 0x133   : > { %v975_v56 = vmul.f32 %v1085_v55, %v1458_v39 }
 0x134   : > { %1086 = vpow2.f32 %v923_v54 }
 0x135   : > { %1088 = vpow2.f32 %v975_v56 }
 0x13e   : > { %v1087_v4 = vpop.eup %1086 }
 0x13f   : > { %v948_v7 = vsel %vm1508_vm5, 2143289344, %v1087_v4  ;;  %v1089_v9 = vpop.eup %1088  ;;  %vm999_vm5 = vmand %vm993_vm12, %vm1485_vm10  ;;  %vm946_vm10 = vcmp.eq.f32.partialorder %v1468_v43, 2139095040 }
 0x140   : > { %v950_v10 = vsel %vm942_vm4, %v949_v2, %v948_v7  ;;  %v1000_v13 = vsel %vm999_vm5, 2143289344, %v1089_v9  ;;  %vm951_vm4 = vmand %vm944_vm6, %vm1497_vm2  ;;  %vm1724_vm6 = vcmp.eq.f32.partialorder %v1461_v40, 2139095040  ;;  %vm1010_vm5 = vcmp.eq.f32.partialorder %v1465_v42, 3212836864 }
 0x141   : > { %v952_v12 = vxor.u32 2147483648, %v950_v10  ;;  %v1002_v14 = vsel %vm994_vm3, %v949_v2, %v1000_v13  ;;  %vm1003_vm3 = vmand %vm996_vm13, %vm1497_vm2  ;;  %v1011_v22 = vsel %vm1010_vm5, 1065353216, %v1009_v15  ;;  %vm998_vm2 = vcmp.eq.f32.partialorder %v1473_v47, 2139095040 }
 0x142   : > { %v1004_v19 = vxor.u32 2147483648, %v1002_v14  ;;  %vm970_vm13 = vmor %vm943_vm0, %vm1725_vm7 }
 0x143   : > { %v953_v16 = vsel %vm951_vm4, %v952_v12, %v950_v10  ;;  %vm1726_vm4 = vmmov %vm1724_vm6 }
 0x144   : > { %v960_v20 = vsel %vm1724_vm6, %v959_v17, %v953_v16  ;;  %v1005_v21 = vsel %vm1003_vm3, %v1004_v19, %v1002_v14  ;;  %vm1728_vm0 = vmmov %vm1725_vm7 }
 0x145   : > { %v965_v1 = vsel %vm946_vm10, %v964_v18, %v960_v20  ;;  %v1012_v24 = vsel %vm1726_vm4, %v1011_v22, %v1005_v21  ;;  %vm1022_vm10 = vmor %vm995_vm14, %vm1728_vm0 }
 0x146   : > { %v969_v23 = vsel %vm968_vm15, 2143289344, %v965_v1  ;;  %v1017_v27 = vsel %vm998_vm2, %v1016_v25, %v1012_v24  ;;  %vm1729_vm12 = vmmov %vm1727_vm8 }
 0x147   : > { %v971_v26 = vsel %vm970_vm13, 1065353216, %v969_v23  ;;  %v1021_v29 = vsel %vm1020_vm11, 2143289344, %v1017_v27 }
 0x148   : > { %v972_v28 = vsel %vm1727_vm8, %v1463_v41, %v971_v26  ;;  %v1023_v30 = vsel %vm1022_vm10, 1065353216, %v1021_v29 }
 0x149   : > { %v1024_v31 = vsel %vm1729_vm12, %v1465_v42, %v1023_v30 }
 0x14a   : > { %v521_v33 = vadd.f32 %v1024_v31, %v972_v28 }
 0x14c   : > { %v523_v35 = vmul.f32 %v522_v32, %v521_v33 }
 0x14e   : > { %v524_v36 = vmul.f32 %v523_v35, %v334_v34 }
 0x150   : > { %v534_v37 = vrot.slane %v524_v36, %v358_v6 }
 0x152   : > { %v535_v40 = vmul.f32 %v534_v37, %v529_v38 }
 0x154   : > { %v536_v41 = vmul.f32 1.442695, %v535_v40 }
 0x156   : > { %1090 = vpow2.f32 %v536_v41 }
 0x157   : > { %1092 = vrcp.f32 %v334_v34 }
 0x160   : > { %v1091_v43 = vpop.eup %1090 }
 0x161   : > { %v543_v45 = vmul.f32 %v1091_v43, %v541_v44  ;;  %v1093_v54 = vpop.eup %1092 }
 0x163   : > { %v545_v46 = vsel %vm544_vm9, %v543_v45, 0.0 }
 0x164   : > { %v546_v39 = vrot.slane %v545_v46, 4 }
 0x166   : > { %v547_v42 = vadd.f32 %v546_v39, %v545_v46 }
 0x168   : > { %v548_v47 = vrot.slane %v547_v42, 2 }
 0x16a   : > { %v549_v3 = vadd.f32 %v548_v47, %v547_v42 }
 0x16c   : > { %v550_v6 = vrot.slane %v549_v3, 1 }
 0x16e   : > { %v551_v49 = vadd.f32 %v550_v6, %v549_v3 }
 0x170   : > { %v552_v52 = vmul.f32 %v551_v49, %v335_v48 }
 0x172   : > { %v555_v53 = vmul.f32 %v554_v51, %v552_v52 }
 0x174   : > { %v556_v55 = vmul.f32 %v555_v53, %v1479_v50 }
 0x176   : > { %v558_v56 = vmul.f32 %v1093_v54, %v556_v55 }
 0x178   : > { %895 = vmatmul.mubr.f32.vlgmr.msra.gmra.mrb[0].mxu1 %v558_v56 }
 0x24b   : > { %v641_v57 = vpop.f32.mrb[0].mxu1 }
 0x24c   : > { %645 = vst [vmem:[%s315_s14] sm:$0x1] %v641_v57  ;;  %v896_v58 = vpop.f32.mrb[1].mxu1 }
 0x24d   : > { %1122 = shalt.err (!%p1119_p2)
}
 0x24e   : > { %s1123_s29 = scalar_lea.hbm %s1642_s18, 16  ;;  %s1127_s13 = scalar_lea.hbm %s1689_s7, 64 }
 0x24f   : > { %p1124_p3 = scmp.ne.s32.totalorder %s1642_s18, %s1123_s29  ;;  %p1128_p8 = scmp.lt.u32.totalorder %s1642_s18, %s1689_s7 }
 0x250   : > { %p1129_p11 = scmp.lt.u32.totalorder %s1127_s13, %s1123_s29  ;;  %p1131_p10 = scmp.lt.u32.totalorder %s1123_s29, %s1642_s18 }
 0x251   : > { %p1125_p4 = pnand %p1124_p3, %p1263_p5 }
 0x252   : > { %p1130_p9 = por %p1129_p11, %p1128_p8 }
 0x253   : > { %p1126_p7 = pneg %p1125_p4 }
 0x254   : > { %p1132_p12 = por %p1131_p10, %p1130_p9 }
 0x256   : > { %p1133_p13 = pnand %p1132_p12, %p1126_p7 }
 0x258   : > { %1136 = shalt.err (!%p1133_p13)
}
 0x259   : > { %1029 = dma.vmem_to_hbm [thread:$0]  (%p1263_p5), %s1637_s15, 16, %s1642_s18, %s647_s19  }
 0x25a PF: > { %p1041_p0 = scmp.ge.s32.totalorder %s1175_s27, 2  ;;  %s671_s21 = sand.u32 1, %s1163_s24  }
 0x25b   : > { %s672_s17 = scalar_lea.sflag [#allocation3], %s671_s21 }
 0x25c   : > { %p1036_p1 = pnand %p1041_p0, %p1267_p6 }
 0x25e   : > { %1158 = dma.done.wait (!%p1036_p1), %s672_s17, 16  }
 0x25f   : > { %1160 = vsyncadd (!%p1036_p1), %s672_s17, 4294967280  ;;  %p18_p2 = scmp.ge.s32.totalorder %s1250_s30, 6   ;;  %s1730_s24 = smov %s1167_s25 }
 0x260   : > { %s1731_s25 = smov %s1171_s26  ;;  %s1732_s26 = smov %s1261_s10 }
 0x261   : > { %s1733_s27 = smov %s1250_s30  ;;  %20 = sbr.rel (!%p18_p2) target bundleno = 4 (0x4), region = 97 }
 0x268   :  { %676 = vsyncpa [#allocation3], 1 }
 0x269   :  { %678 = vsyncpa [#allocation3 + $0x1], 1 }
 0x26a   :  { %679 = vsyncpa [#allocation4], 1 }
 0x26b   :  { %681 = vsyncpa [#allocation4 + $0x1], 1 }

</bundles_post_ra>
